<compile_context>
chip_gen: v7x
topology: tpu7x:2x2x1
jax: 0.10.0
libtpu: 0.0.40
codegen_flags: <defaults>
</compile_context>

<pallas_src>
import functools

import jax
import jax.numpy as jnp
from jax.experimental import pallas as pl
from jax.experimental.pallas import tpu as pltpu

MARGIN = 0.5

LANES = 128
TILE_ROWS = 2048      # rows per grid step: 2048*128*4B = 1 MiB per f32 input buffer
NUM_PARALLEL = 2      # outer 'parallel' grid axis (v7x has 2 TensorCores/chip)


def _margin_loss_kernel(pos_ref, neg_ref, out_ref, acc_ref, *, margin):
    step = pl.program_id(1)

    @pl.when(step == 0)
    def _init():
        acc_ref[...] = jnp.zeros_like(acc_ref)

    # Upcast in-register after the (possibly narrow-dtype) DMA.
    pos = pos_ref[...].astype(jnp.float32)
    neg = neg_ref[...].astype(jnp.float32)
    hinge = jnp.maximum(neg - pos + jnp.float32(margin), jnp.float32(0.0))

    # Sublane-grouped partial sums: (tr,128) -> (tr//8, 8, 128) -> sum over the
    # leading (non-lane/sublane) axis. Stays on the VPU; no per-step XLU reduce
    # and no per-step scalar store.
    tr = hinge.shape[0]
    acc_ref[...] += jnp.sum(hinge.reshape(tr // 8, 8, LANES), axis=0)

    @pl.when(step == pl.num_programs(1) - 1)
    def _finalize():
        out_ref[...] = acc_ref[...]


def margin_loss(positive_scores, negative_scores, margin=MARGIN):
    pos = positive_scores.reshape(-1)
    neg = negative_scores.reshape(-1)
    B = pos.shape[0]
    assert neg.shape[0] == B, "positive/negative score counts must match"

    rows = pl.cdiv(B, LANES)
    if rows <= TILE_ROWS:
        # Small problem: one grid step, no extra per-step overhead.
        tr = max(8, ((rows + 7) // 8) * 8)
        num_par, steps = 1, 1
    else:
        tr = TILE_ROWS
        n_tiles = pl.cdiv(rows, tr)
        num_par = NUM_PARALLEL if n_tiles >= NUM_PARALLEL else 1
        steps = pl.cdiv(n_tiles, num_par)

    padded_rows = num_par * steps * tr
    pad = padded_rows * LANES - B
    if pad:
        # Pad so hinge(pad) == max(0, 0 - 1e30 + margin) == 0; divide by true B.
        pos = jnp.pad(pos, (0, pad), constant_values=jnp.asarray(1e30, pos.dtype))
        neg = jnp.pad(neg, (0, pad), constant_values=jnp.asarray(0.0, neg.dtype))

    pos2d = pos.reshape(padded_rows, LANES)
    neg2d = neg.reshape(padded_rows, LANES)

    in_map = lambda p, i, steps=steps: (p * steps + i, 0)

    partial = pl.pallas_call(
        functools.partial(_margin_loss_kernel, margin=float(margin)),
        out_shape=jax.ShapeDtypeStruct((num_par * 8, LANES), jnp.float32),
        grid=(num_par, steps),
        in_specs=[
            pl.BlockSpec((tr, LANES), in_map),
            pl.BlockSpec((tr, LANES), in_map),
        ],
        out_specs=pl.BlockSpec((8, LANES), lambda p, i: (p, 0)),
        scratch_shapes=[pltpu.VMEM((8, LANES), jnp.float32)],
        compiler_params=pltpu.CompilerParams(
            dimension_semantics=("parallel", "arbitrary")),
    )(pos2d, neg2d)

    # Single tiny cross-lane reduce + mean scale (precomputed reciprocal).
    return jnp.sum(partial) * jnp.float32(1.0 / B)


def margin_loss_ref(pos, neg, margin=MARGIN):
    return jnp.mean(jnp.maximum(neg.reshape(-1) - pos.reshape(-1) + margin, 0.0))


if __name__ == "__main__":
    key = jax.random.PRNGKey(0)

    # Small case (single grid step path).
    kp, kn, key = jax.random.split(key, 3)
    B = 1024
    positive_scores = jax.random.normal(kp, (B,), dtype=jnp.float32)
    negative_scores = jax.random.normal(kn, (B,), dtype=jnp.float32)

    loss = margin_loss(positive_scores, negative_scores)
    jax.block_until_ready(loss)
    ref = margin_loss_ref(positive_scores, negative_scores)
    assert jnp.allclose(loss, ref, rtol=1e-5, atol=1e-6), (loss, ref)

    # Larger, unaligned case exercising tiling, the parallel axis and padding.
    kp2, kn2, key = jax.random.split(key, 3)
    B2 = 3 * TILE_ROWS * LANES + 777
    pos2 = jax.random.normal(kp2, (B2,), dtype=jnp.float32)
    neg2 = jax.random.normal(kn2, (B2,), dtype=jnp.float32)
    loss2 = margin_loss(pos2, neg2)
    jax.block_until_ready(loss2)
    ref2 = margin_loss_ref(pos2, neg2)
    assert jnp.allclose(loss2, ref2, rtol=1e-5, atol=1e-6), (loss2, ref2)

    print("KERNEL_OK")
</pallas_src>

<mosaic_0001>
module attributes {stable_mosaic.version = 11 : i64} {
  func.func @_margin_loss_kernel(%arg0: i32, %arg1: i32, %arg2: memref<8x128xf32, #tpu.memory_space<vmem>>, %arg3: memref<8x128xf32, #tpu.memory_space<vmem>>, %arg4: memref<8x128xf32, #tpu.memory_space<vmem>>, %arg5: memref<8x128xf32, #tpu.memory_space<vmem>>) attributes {dimension_semantics = [#tpu.dimension_semantics<parallel>, #tpu.dimension_semantics<arbitrary>], iteration_bounds = array<i64: 1, 1>, scalar_prefetch = 0 : i64, scratch_operands = 1 : i64, tpu.core_type = #tpu.core_type<tc>, window_params = [{transform_indices = @transform_0, window_bounds = array<i64: 8, 128>}, {transform_indices = @transform_1, window_bounds = array<i64: 8, 128>}, {transform_indices = @transform_2, window_bounds = array<i64: 8, 128>}]} {
    %c0_i32 = arith.constant 0 : i32
    %0 = arith.cmpi eq, %arg1, %c0_i32 : i32
    %1 = arith.extui %0 : i1 to i32
    %c0_i32_0 = arith.constant 0 : i32
    %2 = arith.cmpi ne, %1, %c0_i32_0 : i32
    scf.if %2 {
      %cst_12 = arith.constant 0.000000e+00 : f32
      %18 = vector.broadcast %cst_12 : f32 to vector<8x128xf32>
      %c0_13 = arith.constant 0 : index
      %c0_14 = arith.constant 0 : index
      %19 = vector.load %arg5[%c0_13, %c0_14] : memref<8x128xf32, #tpu.memory_space<vmem>>, vector<8x128xf32>
      tpu.vector_store %arg5[%c0_13, %c0_14], %18 {strides = array<i32>} : memref<8x128xf32, #tpu.memory_space<vmem>>, vector<8x128xf32>,
    } else {
    }
    %c0 = arith.constant 0 : index
    %c0_1 = arith.constant 0 : index
    %3 = vector.load %arg2[%c0, %c0_1] : memref<8x128xf32, #tpu.memory_space<vmem>>, vector<8x128xf32>
    %c0_2 = arith.constant 0 : index
    %c0_3 = arith.constant 0 : index
    %4 = vector.load %arg3[%c0_2, %c0_3] : memref<8x128xf32, #tpu.memory_space<vmem>>, vector<8x128xf32>
    %5 = arith.subf %4, %3 : vector<8x128xf32>
    %cst = arith.constant 5.000000e-01 : f32
    %6 = vector.broadcast %cst : f32 to vector<8x128xf32>
    %7 = arith.addf %5, %6 : vector<8x128xf32>
    %cst_4 = arith.constant 0.000000e+00 : f32
    %8 = vector.broadcast %cst_4 : f32 to vector<8x128xf32>
    %9 = arith.maximumf %7, %8 : vector<8x128xf32>
    %c0_5 = arith.constant 0 : index
    %c0_6 = arith.constant 0 : index
    %10 = vector.load %arg5[%c0_5, %c0_6] : memref<8x128xf32, #tpu.memory_space<vmem>>, vector<8x128xf32>
    %11 = vector.shape_cast %9 : vector<8x128xf32> to vector<1x8x128xf32>
    %cst_7 = arith.constant dense<0.000000e+00> : vector<8x128xf32>
    %12 = vector.multi_reduction <add>, %11, %cst_7 [0] : vector<1x8x128xf32> to vector<8x128xf32>
    %13 = arith.addf %10, %12 : vector<8x128xf32>
    %c0_8 = arith.constant 0 : index
    %c0_9 = arith.constant 0 : index
    %14 = vector.load %arg5[%c0_8, %c0_9] : memref<8x128xf32, #tpu.memory_space<vmem>>, vector<8x128xf32>
    tpu.vector_store %arg5[%c0_8, %c0_9], %13 {strides = array<i32>} : memref<8x128xf32, #tpu.memory_space<vmem>>, vector<8x128xf32>,
    %c0_i32_10 = arith.constant 0 : i32
    %15 = arith.cmpi eq, %arg1, %c0_i32_10 : i32
    %16 = arith.extui %15 : i1 to i32
    %c0_i32_11 = arith.constant 0 : i32
    %17 = arith.cmpi ne, %16, %c0_i32_11 : i32
    scf.if %17 {
      %c0_12 = arith.constant 0 : index
      %c0_13 = arith.constant 0 : index
      %18 = vector.load %arg5[%c0_12, %c0_13] : memref<8x128xf32, #tpu.memory_space<vmem>>, vector<8x128xf32>
      %c0_14 = arith.constant 0 : index
      %c0_15 = arith.constant 0 : index
      %19 = vector.load %arg4[%c0_14, %c0_15] : memref<8x128xf32, #tpu.memory_space<vmem>>, vector<8x128xf32>
      tpu.vector_store %arg4[%c0_14, %c0_15], %18 {strides = array<i32>} : memref<8x128xf32, #tpu.memory_space<vmem>>, vector<8x128xf32>,
    } else {
    }
    return
  }
  func.func @transform_0(%arg0: i32, %arg1: i32) -> (i32, i32) {
    %c1_i32 = arith.constant 1 : i32
    %0 = arith.muli %arg0, %c1_i32 : i32
    %1 = arith.addi %0, %arg1 : i32
    %c0_i32 = arith.constant 0 : i32
    %c0_i32_0 = arith.constant 0 : i32
    return %1, %c0_i32 : i32, i32
  }
  func.func @transform_1(%arg0: i32, %arg1: i32) -> (i32, i32) {
    %c1_i32 = arith.constant 1 : i32
    %0 = arith.muli %arg0, %c1_i32 : i32
    %1 = arith.addi %0, %arg1 : i32
    %c0_i32 = arith.constant 0 : i32
    %c0_i32_0 = arith.constant 0 : i32
    return %1, %c0_i32 : i32, i32
  }
  func.func @transform_2(%arg0: i32, %arg1: i32) -> (i32, i32) {
    %c0_i32 = arith.constant 0 : i32
    %c0_i32_0 = arith.constant 0 : i32
    return %arg0, %c0_i32 : i32, i32
  }
}

</mosaic_0001>

<bundles_post_ra>
// kernel: tpu_custom_call.1
= control target key start
LH: loop header
LB: loop body
LE: loop exit
PB: predicated region body
PF: predicated region fallthrough
CT: control target
= control target key end

     0   :  { %7 = vsyncpa [#allocation4], 0  ;;  %s208_s0 = inlined_call_operand.hbm [shape: f32[8,128], index: 0, kind: input, shape index: {}]   ;;  %s209_s1 = inlined_call_operand.hbm [shape: f32[8,128], index: 1, kind: input, shape index: {}]   ;;  %s210_s2 = inlined_call_operand.hbm [shape: f32[8,128], index: 2, kind: output, shape index: {}]  }
   0x1   :  { %8 = vsyncpa [#allocation7], 0 }
   0x2   :  { %9 = vsyncpa [#allocation5], 0  ;;  %s154_s9 = smov [#allocation3]   ;;  %s155_s11 = smov [#allocation6]  }
   0x3   :  { %s19_s10 = sshll.u32 %s154_s9, 4  ;;  %s32_s12 = sshll.u32 %s155_s11, 4  ;;  %s20_s10 = int_to_ptr.vmem [resolvable:$true] %s19_s10  ;;  %s33_s12 = int_to_ptr.vmem [resolvable:$true] %s32_s12 }
   0x4   :  { %s82_s15 = scalar_lea.hbm %s208_s0, 128 }
   0x5   :  { %p83_p0 = scmp.ne.s32.totalorder %s208_s0, %s82_s15  ;;  %p86_p1 = scmp.lt.u32.totalorder %s82_s15, %s208_s0 }
   0x7   :  { %p88_p2 = pnand %p86_p1, %p83_p0 }
   0x9   :  { %91 = shalt.err (!%p88_p2)
}
   0xa   :  { %s92_s20 = scalar_lea.vmem %s20_s10, 128  ;;  %p97_p4 = scmp.lt.s32.totalorder %s20_s10, %s20_s10 }
   0xb   :  { %p93_p3 = scmp.ne.s32.totalorder %s20_s10, %s92_s20  ;;  %p98_p5 = scmp.lt.s32.totalorder %s92_s20, %s92_s20 }
   0xd   :  { %p99_p6 = por %p98_p5, %p97_p4 }
   0xf   :  { %p100_p7 = pnand %p99_p6, %p93_p3 }
  0x11   :  { %103 = shalt.err (!%p100_p7)
}
  0x12   :  { %22 = dma.hbm_to_vmem [thread:$0]  %s208_s0, 128, %s20_s10, [#allocation4]  }
  0x13   :  { %s104_s25 = scalar_lea.hbm %s209_s1, 128 }
  0x14   :  { %p105_p8 = scmp.ne.s32.totalorder %s209_s1, %s104_s25  ;;  %p108_p9 = scmp.lt.u32.totalorder %s104_s25, %s209_s1 }
  0x16   :  { %p110_p10 = pnand %p108_p9, %p105_p8 }
  0x18   :  { %113 = shalt.err (!%p110_p10)
}
  0x19   :  { %s114_s30 = scalar_lea.vmem %s33_s12, 128  ;;  %p119_p12 = scmp.lt.s32.totalorder %s33_s12, %s33_s12 }
  0x1a   :  { %p115_p11 = scmp.ne.s32.totalorder %s33_s12, %s114_s30  ;;  %p120_p13 = scmp.lt.s32.totalorder %s114_s30, %s114_s30 }
  0x1c   :  { %p121_p0 = por %p120_p13, %p119_p12 }
  0x1e   :  { %p122_p1 = pnand %p121_p0, %p115_p11 }
  0x20   :  { %125 = shalt.err (!%p122_p1)
}
  0x21   :  { %35 = dma.hbm_to_vmem [thread:$0]  %s209_s1, 128, %s33_s12, [#allocation7]  }
  0x22   :  { %148 = dma.done.wait [#allocation4], 128  }
  0x23   :  { %149 = vsyncadd [#allocation4], 4294967168 }
  0x24   :  { %150 = dma.done.wait [#allocation7], 128  }
  0x25   :  { %151 = vsyncadd [#allocation7], 4294967168  ;;  %v49_v0 = vld [vmem:[#allocation3] sm:$0xff]  ;;  %v50_v1 = vld [vmem:[#allocation6] sm:$0xff]  ;;  %s156_s4 = smov [#allocation8]  }
  0x26   :  { %v51_v2 = vsub.f32 %v50_v1, %v49_v0  ;;  %s69_s5 = sshll.u32 %s156_s4, 4  ;;  %s70_s5 = int_to_ptr.vmem [resolvable:$true] %s69_s5 }
  0x27   :  { %s126_s6 = scalar_lea.vmem %s70_s5, 128  ;;  %p131_p3 = scmp.lt.s32.totalorder %s70_s5, %s70_s5 }
  0x28   :  { %v52_v3 = vadd.f32 0.5, %v51_v2  ;;  %p127_p2 = scmp.ne.s32.totalorder %s70_s5, %s126_s6  ;;  %p132_p4 = scmp.lt.s32.totalorder %s126_s6, %s126_s6 }
  0x2a   :  { %v53_v4 = vmax.f32 %v52_v3, 0.0  ;;  %p133_p5 = por %p132_p4, %p131_p3 }
  0x2c   :  { %62 = vst [vmem:[#allocation8] sm:$0xff] %v53_v4  ;;  %p134_p6 = pnand %p133_p5, %p127_p2 }
  0x2e   :  { %137 = shalt.err (!%p134_p6)
}
  0x2f   :  { %s138_s8 = scalar_lea.hbm %s210_s2, 128 }
  0x30   :  { %p139_p7 = scmp.ne.s32.totalorder %s210_s2, %s138_s8  ;;  %p142_p8 = scmp.lt.u32.totalorder %s138_s8, %s210_s2 }
  0x32   :  { %p144_p9 = pnand %p142_p8, %p139_p7 }
  0x34   :  { %147 = shalt.err (!%p144_p9)
}
  0x35   :  { %72 = dma.vmem_to_hbm [thread:$0]  %s70_s5, 128, %s210_s2, [#allocation5]  }
  0x36   :  { %152 = dma.done.wait [#allocation5], 128  }
  0x37   :  { %153 = vsyncadd [#allocation5], 4294967168 }
  0x38   :  { %76 = vsyncpa [#allocation4], 1 }
  0x39   :  { %77 = vsyncpa [#allocation7], 1 }
  0x3a   :  { %78 = vsyncpa [#allocation5], 1 }

</bundles_post_ra>
